<compile_context>
chip_gen: v6e
topology: v6e:2x2x1
jax: 0.10.0
libtpu: 0.0.40
codegen_flags: <defaults>
</compile_context>

<pallas_src>
import jax
import jax.numpy as jnp
from jax.experimental import pallas as pl
from jax.experimental.pallas import tpu as pltpu


def _normalize_kernel(x_ref, mean_ref, inv_std_ref, o_ref):
    # Elementwise standardization on one batch tile: (x - mean) * inv_std,
    # broadcasting the [1, D] statistics over the batch (sublane) axis.
    o_ref[...] = (x_ref[...] - mean_ref[...]) * inv_std_ref[...]


def _round_up(x: int, m: int) -> int:
    return ((x + m - 1) // m) * m


def normalize_forward(data: jax.Array, mean: jax.Array, std: jax.Array) -> jax.Array:
    """data: [batch, D] float32; mean/std: [D] float32 -> [batch, D] float32."""
    batch, d = data.shape

    # One-time [D]-length reciprocal in the wrapper; kernel multiplies.
    inv_std = 1.0 / std

    # ---- layout plumbing: lane-dense feature dim ------------------------------
    d_pad = _round_up(d, 128)

    # ---- generation-aware batch tile ------------------------------------------
    # Double-buffered input + output => ~4 * tile_b * d_pad * 4 bytes of VMEM.
    # Budget 8 MiB keeps us comfortably inside v5e's 16 MiB scoped default and
    # v7x's tighter 64 MiB physical VMEM while still allowing 512-1024 row
    # tiles for moderate D (the measured HBM-roofline sweet spot on v6e).
    vmem_budget = 8 * 1024 * 1024
    bytes_per_row = d_pad * 4  # f32
    tile_b = vmem_budget // (4 * bytes_per_row)
    tile_b = max(8, min(1024, (tile_b // 8) * 8))
    tile_b = min(tile_b, _round_up(batch, 8))  # don't over-tile tiny batches

    b_pad = _round_up(batch, tile_b)

    # Pad to (b_pad, d_pad).  Pad mean with 0 and inv_std with 1 so the padded
    # lanes stay finite (they're sliced off afterwards anyway).
    x = data
    if b_pad != batch or d_pad != d:
        x = jnp.pad(x, ((0, b_pad - batch), (0, d_pad - d)))
    mean2 = jnp.pad(mean, (0, d_pad - d)).reshape(1, d_pad)
    inv_std2 = jnp.pad(inv_std, (0, d_pad - d), constant_values=1.0).reshape(1, d_pad)

    grid = (b_pad // tile_b,)

    out = pl.pallas_call(
        _normalize_kernel,
        out_shape=jax.ShapeDtypeStruct((b_pad, d_pad), data.dtype),
        grid_spec=pl.GridSpec(
            grid=grid,
            in_specs=[
                # batch-tiled data; double-buffered by the Pallas pipeline.
                pl.BlockSpec((tile_b, d_pad), lambda i: (i, 0)),
                # statistics stay VMEM-resident across all grid steps.
                pl.BlockSpec((1, d_pad), lambda i: (0, 0)),
                pl.BlockSpec((1, d_pad), lambda i: (0, 0)),
            ],
            out_specs=pl.BlockSpec((tile_b, d_pad), lambda i: (i, 0)),
        ),
        compiler_params=pltpu.CompilerParams(
            # Batch tiles are independent -> megacore sharding on v7x.
            dimension_semantics=("parallel",),
        ),
    )(x, mean2, inv_std2)

    if b_pad != batch or d_pad != d:
        out = out[:batch, :d]
    return out


# TODO(synk): matten's irreps-aware subclasses apply one scalar mean/norm per
# irrep block (e.g. only the l=0 channels get a mean shift); here we use a
# generic per-feature mean/std, which is the dense special case.


if __name__ == "__main__":
    key = jax.random.PRNGKey(0)
    batch, D = 8, 32  # D = dim implied by self.irreps, e.g. "32x0e"

    k_x, k_m, k_s = jax.random.split(key, 3)
    x = jax.random.normal(k_x, (batch, D), dtype=jnp.float32)

    # Deterministic "learned" statistics (would normally come from fit()).
    mean = 0.1 * jax.random.normal(k_m, (D,), dtype=jnp.float32)
    std = 1.0 + 0.05 * jnp.abs(jax.random.normal(k_s, (D,), dtype=jnp.float32))

    out = normalize_forward(x, mean, std)
    jax.block_until_ready(out)

    # Reference check in plain JAX (exact division; kernel uses reciprocal
    # multiply, within ~1 ulp).
    ref = (x - mean[None, :]) / std[None, :]
    assert out.shape == (batch, D)
    assert jnp.allclose(out, ref, atol=1e-6, rtol=1e-6)

    print("KERNEL_OK")
</pallas_src>

<mosaic_0001>
module attributes {stable_mosaic.version = 11 : i64} {
  func.func @_normalize_kernel(%arg0: i32, %arg1: memref<8x128xf32, #tpu.memory_space<vmem>>, %arg2: memref<1x128xf32, #tpu.memory_space<vmem>>, %arg3: memref<1x128xf32, #tpu.memory_space<vmem>>, %arg4: memref<8x128xf32, #tpu.memory_space<vmem>>) attributes {dimension_semantics = [#tpu.dimension_semantics<parallel>], iteration_bounds = array<i64: 1>, scalar_prefetch = 0 : i64, scratch_operands = 0 : i64, tpu.core_type = #tpu.core_type<tc>, window_params = [{transform_indices = @transform_0, window_bounds = array<i64: 8, 128>}, {pipeline_mode = #tpu.pipeline_mode<synchronous>, transform_indices = @transform_1, window_bounds = array<i64: 1, 128>}, {pipeline_mode = #tpu.pipeline_mode<synchronous>, transform_indices = @transform_2, window_bounds = array<i64: 1, 128>}, {transform_indices = @transform_3, window_bounds = array<i64: 8, 128>}]} {
    %c0 = arith.constant 0 : index
    %c0_0 = arith.constant 0 : index
    %0 = vector.load %arg1[%c0, %c0_0] : memref<8x128xf32, #tpu.memory_space<vmem>>, vector<8x128xf32>
    %c0_1 = arith.constant 0 : index
    %c0_2 = arith.constant 0 : index
    %1 = vector.load %arg2[%c0_1, %c0_2] : memref<1x128xf32, #tpu.memory_space<vmem>>, vector<1x128xf32>
    %2 = vector.broadcast %1 : vector<1x128xf32> to vector<8x128xf32>
    %3 = arith.subf %0, %2 : vector<8x128xf32>
    %c0_3 = arith.constant 0 : index
    %c0_4 = arith.constant 0 : index
    %4 = vector.load %arg3[%c0_3, %c0_4] : memref<1x128xf32, #tpu.memory_space<vmem>>, vector<1x128xf32>
    %5 = vector.broadcast %4 : vector<1x128xf32> to vector<8x128xf32>
    %6 = arith.mulf %3, %5 : vector<8x128xf32>
    %c0_5 = arith.constant 0 : index
    %c0_6 = arith.constant 0 : index
    %7 = vector.load %arg4[%c0_5, %c0_6] : memref<8x128xf32, #tpu.memory_space<vmem>>, vector<8x128xf32>
    tpu.vector_store %arg4[%c0_5, %c0_6], %6 {strides = array<i32>} : memref<8x128xf32, #tpu.memory_space<vmem>>, vector<8x128xf32>,
    return
  }
  func.func @transform_0(%arg0: i32) -> (i32, i32) {
    %c0_i32 = arith.constant 0 : i32
    %c0_i32_0 = arith.constant 0 : i32
    return %arg0, %c0_i32 : i32, i32
  }
  func.func @transform_1(%arg0: i32) -> (i32, i32) {
    %c0_i32 = arith.constant 0 : i32
    %c0_i32_0 = arith.constant 0 : i32
    %c0_i32_1 = arith.constant 0 : i32
    return %c0_i32, %c0_i32_0 : i32, i32
  }
  func.func @transform_2(%arg0: i32) -> (i32, i32) {
    %c0_i32 = arith.constant 0 : i32
    %c0_i32_0 = arith.constant 0 : i32
    %c0_i32_1 = arith.constant 0 : i32
    return %c0_i32, %c0_i32_0 : i32, i32
  }
  func.func @transform_3(%arg0: i32) -> (i32, i32) {
    %c0_i32 = arith.constant 0 : i32
    %c0_i32_0 = arith.constant 0 : i32
    return %arg0, %c0_i32 : i32, i32
  }
}

</mosaic_0001>

<bundles_post_ra>
// kernel: tpu_custom_call.1
= control target key start
LH: loop header
LB: loop body
LE: loop exit
PB: predicated region body
PF: predicated region fallthrough
CT: control target
= control target key end

     0   :  { %8 = vsyncpa [#allocation3], 0  ;;  %s142_s0 = inlined_call_operand.hbm [shape: f32[8,128], index: 0, kind: input, shape index: {}]   ;;  %s143_s1 = inlined_call_operand.vmem [shape: f32[1,128], index: 1, kind: input, shape index: {}]   ;;  %s144_s2 = inlined_call_operand.vmem [shape: f32[1,128], index: 2, kind: input, shape index: {}]   ;;  %s145_s3 = inlined_call_operand.hbm [shape: f32[8,128], index: 3, kind: output, shape index: {}]  }
   0x1   :  { %9 = vsyncpa [#allocation4], 0  ;;  %s108_s12 = smov [#allocation2]  }
   0x2   :  { %s16_s13 = sshll.u32 %s108_s12, 4  ;;  %s17_s13 = int_to_ptr.vmem [resolvable:$true] %s16_s13 }
   0x3   :  { %s72_s14 = scalar_lea.vmem %s17_s13, 128  ;;  %p77_p1 = scmp.lt.s32.totalorder %s17_s13, %s17_s13 }
   0x4   :  { %p73_p0 = scmp.ne.s32.totalorder %s17_s13, %s72_s14  ;;  %p78_p2 = scmp.lt.s32.totalorder %s72_s14, %s72_s14 }
   0x6   :  { %p79_p3 = por %p78_p2, %p77_p1 }
   0x8   :  { %p80_p4 = pnand %p79_p3, %p73_p0 }
   0xa   :  { %83 = shalt.err (!%p80_p4)
}
   0xb   :  { %19 = dma.hbm_to_vmem [thread:$0]  %s142_s0, 128, %s17_s13, [#allocation3]  }
   0xc   :  { %104 = dma.done.wait [#allocation3], 128  }
   0xd   :  { %105 = vsyncadd [#allocation3], 4294967168  ;;  %v27_v0 = vld [vmem:[#allocation2] sm:$0xff]  ;;  %s109_s21 = smov [#allocation5]  }
   0xe   :  { %v60_v1 = vld [vmem:[%s143_s1] ss:$0 sm:$0xff]  ;;  %s51_s22 = sshll.u32 %s109_s21, 4  ;;  %s52_s22 = int_to_ptr.vmem [resolvable:$true] %s51_s22 }
   0xf   :  { %v61_v2 = vld [vmem:[%s144_s2] ss:$0 sm:$0xff]  ;;  %v35_v3 = vsub.f32 %v27_v0, %v60_v1  ;;  %s84_s23 = scalar_lea.vmem %s52_s22, 128  ;;  %p89_p6 = scmp.lt.s32.totalorder %s52_s22, %s52_s22 }
  0x10   :  { %p85_p5 = scmp.ne.s32.totalorder %s52_s22, %s84_s23  ;;  %p90_p7 = scmp.lt.s32.totalorder %s84_s23, %s84_s23 }
  0x11   :  { %v43_v4 = vmul.f32 %v61_v2, %v35_v3 }
  0x12   :  { %p91_p8 = por %p90_p7, %p89_p6 }
  0x13   :  { %44 = vst [vmem:[#allocation5] sm:$0xff] %v43_v4 }
  0x14   :  { %p92_p9 = pnand %p91_p8, %p85_p5 }
  0x16   :  { %95 = shalt.err (!%p92_p9)
}
  0x17   :  { %54 = dma.vmem_to_hbm [thread:$0]  %s52_s22, 128, %s145_s3, [#allocation4]  }
  0x18   :  { %106 = dma.done.wait [#allocation4], 128  }
  0x19   :  { %107 = vsyncadd [#allocation4], 4294967168 }
  0x1a   :  { %58 = vsyncpa [#allocation3], 1 }
  0x1b   :  { %59 = vsyncpa [#allocation4], 1 }

</bundles_post_ra>
